<compile_context>
chip_gen: v7x
topology: tpu7x:2x2x1
jax: 0.10.0
libtpu: 0.0.40
codegen_flags: <defaults>
</compile_context>

<pallas_src>
import functools

import jax
import jax.numpy as jnp
from jax import lax
from jax.experimental import pallas as pl
from jax.experimental.pallas import tpu as pltpu

BN_EPS = 1e-5


# --------------------------------------------------------------------------
# Kernels
# --------------------------------------------------------------------------
def _conv_stats_kernel(p_ref, w_ref, conv_ref, sum_ref, sq_ref):
    """Pass 1.  Grid = (n, m_outer, m_inner); m_inner is the "arbitrary" axis.

    p_ref:    (1, K, tm)       im2col patches tile (compute_dtype)
    w_ref:    (Cout, K)        block-diagonal dense weight (compute_dtype)
    conv_ref: (1, Cout, tm)    pre-BN conv tile (conv_dtype)
    sum_ref:  (1, 1, Cout, 1)  per-(n, m_outer) channel sum   (f32, resident)
    sq_ref:   (1, 1, Cout, 1)  per-(n, m_outer) channel sumsq (f32, resident)
    """
    mi = pl.program_id(2)

    # One MXU matmul per tile: [Cout, K] @ [K, tm] -> [Cout, tm], f32 acc.
    acc = jnp.dot(w_ref[...], p_ref[0], preferred_element_type=jnp.float32)
    conv_ref[0] = acc.astype(conv_ref.dtype)

    # BN statistics from the f32 accumulator (single traversal of the tile).
    # (Lane-wise partial accumulators were suggested; skipped pending a bundle
    #  dump showing the XLU as the binding unit -- kernel is HBM-bound today.)
    tile_sum = jnp.sum(acc, axis=1, keepdims=True)        # [Cout, 1]
    tile_sq = jnp.sum(acc * acc, axis=1, keepdims=True)   # [Cout, 1]

    @pl.when(mi == 0)
    def _():
        sum_ref[0, 0] = tile_sum
        sq_ref[0, 0] = tile_sq

    @pl.when(mi > 0)
    def _():
        sum_ref[0, 0] += tile_sum
        sq_ref[0, 0] += tile_sq


def _bn_relu_kernel(conv_ref, scale_ref, shift_ref, o_ref):
    """Pass 2: y = conv * scale + shift, then ReLU.  Fully parallel grid."""
    y = conv_ref[0].astype(jnp.float32) * scale_ref[0] + shift_ref[0]
    o_ref[0] = jnp.maximum(y, 0.0).astype(o_ref.dtype)


# --------------------------------------------------------------------------
# JAX-side glue
# --------------------------------------------------------------------------
@functools.lru_cache(maxsize=None)
def _vmem_limits():
    """Generation-aware scoped-VMEM request and double-buffered budget."""
    cap = 64 * 1024 * 1024          # conservative fallback (v7x physical VMEM)
    try:
        cap = int(getattr(pltpu.get_tpu_info(), "vmem_capacity_bytes", cap))
    except Exception:
        pass
    # ~48 MiB scoped / 24 MiB working set on v7x; ~96 / 48 MiB on v5e & v6e.
    limit = min((cap * 3) // 4, 100 * 1024 * 1024)
    return limit, limit // 2


def _pick_m_tile(hw, K, cout, in_bytes, conv_bytes, budget, max_m_tile):
    """Pick the lane tile: minimise padded Ho*Wo, then grid steps, in budget."""
    cands = {128, 256, 512, 1024, 2048, 4096, 8192, 16384}
    for d in (1, 2, 4):                  # exact-ish fits for awkward Ho*Wo
        cands.add(max(128, int(pl.cdiv(int(pl.cdiv(hw, d)), 128)) * 128))
    best, best_key = None, None
    for tm in sorted(cands):
        if max_m_tile is not None and tm > max(128, max_m_tile):
            continue
        work1 = (2 * K * tm * in_bytes + 2 * cout * K * in_bytes
                 + 2 * cout * tm * conv_bytes + 3 * cout * tm * 4)
        work2 = 2 * cout * tm * conv_bytes + 4 * cout * tm * 4
        if max(work1, work2) > budget:
            continue
        hw_pad = int(pl.cdiv(hw, tm)) * tm
        key = (hw_pad, hw_pad // tm, -tm)
        if best_key is None or key < best_key:
            best, best_key = tm, key
    if best is None:
        best = 128
    return best, int(pl.cdiv(hw, best)) * best


def _im2col(x_nchw, k, stride, padding, dtype, hw_pad):
    """NCHW input -> patches [N, Cin*k*k, hw_pad] in `dtype`.

    K is ordered (ci, kh, kw) to match the OIHW weight flattening.  Patches
    are built directly in the compute dtype and directly in the kernel's
    target layout; the only materialisation is the stack itself (no post-hoc
    transpose of the k^2-sized tensor).
    """
    N, Cin, H, W = x_nchw.shape
    Ho = (H + 2 * padding - k) // stride + 1
    Wo = (W + 2 * padding - k) // stride + 1
    xp = jnp.pad(x_nchw.astype(dtype),
                 ((0, 0), (0, 0), (padding, padding), (padding, padding)))
    cols = []
    for kh in range(k):
        for kw in range(k):
            cols.append(xp[:, :, kh:kh + stride * Ho:stride,
                           kw:kw + stride * Wo:stride])
    p = jnp.stack(cols, axis=2)                  # [N, Cin, k*k, Ho, Wo]
    p = p.reshape(N, Cin * k * k, Ho * Wo)       # adjacent-dim merges (view)
    if hw_pad != Ho * Wo:
        p = jnp.pad(p, ((0, 0), (0, 0), (0, hw_pad - Ho * Wo)))
    return p


@functools.partial(
    jax.jit,
    static_argnames=("k", "stride", "padding", "groups", "max_m_tile",
                     "compute_dtype", "conv_dtype"))
def conv_bn_relu(x_nchw, weight, gamma, beta, *, k, stride, padding, groups,
                 max_m_tile=None, compute_dtype=jnp.bfloat16,
                 conv_dtype=jnp.bfloat16):
    """Fused Conv2d(groups) + BatchNorm2d(training batch stats) + ReLU.

    x_nchw:  [N, Cin, H, W]       (PyTorch layout)
    weight:  [Cout, Cin/G, k, k]  (PyTorch OIHW layout)
    gamma, beta: [Cout]
    returns: [N, Cout, Ho, Wo]    (f32)
    """
    N, Cin, H, W = x_nchw.shape
    Cout = weight.shape[0]
    assert Cin % groups == 0 and Cout % groups == 0
    cin_g = Cin // groups
    cout_g = Cout // groups
    K = Cin * k * k

    in_bytes = jnp.dtype(compute_dtype).itemsize
    conv_bytes = jnp.dtype(conv_dtype).itemsize
    vmem_limit, vmem_budget = _vmem_limits()

    Ho = (H + 2 * padding - k) // stride + 1
    Wo = (W + 2 * padding - k) // stride + 1
    hw = Ho * Wo
    tm, hw_pad = _pick_m_tile(hw, K, Cout, in_bytes, conv_bytes,
                              vmem_budget, max_m_tile)
    n_mt = hw_pad // tm
    # M-outer "parallel" split so both v7x TensorCores are busy when N == 1.
    n_mo = 2 if (N == 1 and n_mt >= 2 and n_mt % 2 == 0) else 1
    n_mi = n_mt // n_mo

    # Patches [N, K, hw_pad].  Padded lanes are all-zero patches: conv == 0
    # there, so they add nothing to the BN sums and are sliced off at the end.
    p = _im2col(x_nchw, k, stride, padding, compute_dtype, hw_pad)

    # Grouped conv as one dense matmul against a block-diagonal weight
    # [Cout, Cin*k*k] (exact zeros outside each group's input channels).
    w_g = weight.reshape(groups, cout_g, cin_g, k, k).astype(compute_dtype)
    eye = jnp.eye(groups, dtype=compute_dtype)
    w_bd = (w_g[:, :, None, :, :, :]
            * eye[:, None, :, None, None, None]).reshape(Cout, K)

    # ---- Pass 1: conv matmul + per-(n, m_outer) channel sum / sumsq. ----
    conv, s1, s2 = pl.pallas_call(
        _conv_stats_kernel,
        out_shape=(
            jax.ShapeDtypeStruct((N, Cout, hw_pad), conv_dtype),
            jax.ShapeDtypeStruct((N, n_mo, Cout, 1), jnp.float32),
            jax.ShapeDtypeStruct((N, n_mo, Cout, 1), jnp.float32),
        ),
        grid_spec=pltpu.PrefetchScalarGridSpec(
            num_scalar_prefetch=0,
            grid=(N, n_mo, n_mi),
            in_specs=[
                pl.BlockSpec((1, K, tm),
                             lambda n, mo, mi: (n, 0, mo * n_mi + mi)),
                pl.BlockSpec((Cout, K), lambda n, mo, mi: (0, 0)),
            ],
            out_specs=(
                pl.BlockSpec((1, Cout, tm),
                             lambda n, mo, mi: (n, 0, mo * n_mi + mi)),
                pl.BlockSpec((1, 1, Cout, 1), lambda n, mo, mi: (n, mo, 0, 0)),
                pl.BlockSpec((1, 1, Cout, 1), lambda n, mo, mi: (n, mo, 0, 0)),
            ),
        ),
        compiler_params=pltpu.CompilerParams(
            dimension_semantics=("parallel", "parallel", "arbitrary"),
            vmem_limit_bytes=vmem_limit,
        ),
    )(p, w_bd)

    # Epilogue: merge partial sums, fold batch stats + gamma/beta into one
    # per-channel scale/shift.  Biased variance (torch train-mode BN).
    cnt = jnp.float32(N * hw)
    s1t = jnp.sum(s1, axis=(0, 1))[:, 0]                    # [Cout]
    s2t = jnp.sum(s2, axis=(0, 1))[:, 0]
    mean = s1t / cnt
    var = jnp.maximum(s2t / cnt - mean * mean, 0.0)
    inv_std = lax.rsqrt(var + BN_EPS)
    scale = gamma.astype(jnp.float32) * inv_std
    shift = beta.astype(jnp.float32) - mean * scale
    scale3 = scale.reshape(1, Cout, 1)
    shift3 = shift.reshape(1, Cout, 1)

    # ---- Pass 2: normalise + ReLU (elementwise, fully parallel). ----
    # Output layout [N, Cout, hw_pad] so the final NCHW result is a free
    # reshape.  (input_output_aliases could reuse the conv buffer, but that
    # requires conv_dtype == float32; the bf16 intermediate saves more HBM.)
    out = pl.pallas_call(
        _bn_relu_kernel,
        out_shape=jax.ShapeDtypeStruct((N, Cout, hw_pad), jnp.float32),
        grid_spec=pltpu.PrefetchScalarGridSpec(
            num_scalar_prefetch=0,
            grid=(N, n_mt),
            in_specs=[
                pl.BlockSpec((1, Cout, tm), lambda n, m: (n, 0, m)),
                pl.BlockSpec((1, Cout, 1), lambda n, m: (0, 0, 0)),
                pl.BlockSpec((1, Cout, 1), lambda n, m: (0, 0, 0)),
            ],
            out_specs=pl.BlockSpec((1, Cout, tm), lambda n, m: (n, 0, m)),
        ),
        compiler_params=pltpu.CompilerParams(
            dimension_semantics=("parallel", "parallel"),
            vmem_limit_bytes=vmem_limit,
        ),
    )(conv, scale3, shift3)

    return out[:, :, :hw].reshape(N, Cout, Ho, Wo)


# --------------------------------------------------------------------------
# Reference & self-test
# --------------------------------------------------------------------------
def _reference(x_nchw, weight, gamma, beta, *, k, stride, padding, groups):
    """Plain-JAX reference: f32 conv + train-mode BN + ReLU."""
    del k  # implied by weight shape
    conv = lax.conv_general_dilated(
        x_nchw, weight,
        window_strides=(stride, stride),
        padding=((padding, padding), (padding, padding)),
        dimension_numbers=("NCHW", "OIHW", "NCHW"),
        feature_group_count=groups,
        precision=lax.Precision.HIGHEST,
    )
    mean = jnp.mean(conv, axis=(0, 2, 3), keepdims=True)
    var = jnp.mean(jnp.square(conv - mean), axis=(0, 2, 3), keepdims=True)
    y = (conv - mean) * lax.rsqrt(var + BN_EPS)
    y = y * gamma.reshape(1, -1, 1, 1) + beta.reshape(1, -1, 1, 1)
    return jnp.maximum(y, 0.0)


if __name__ == "__main__":
    # ConvBN(in_channels=4, out_channels=8, kernel_size=3, stride=1,
    #        padding=1, cardinality=2, include_batchnorm=True, act=ReLU)
    N, Cin, H, W = 2, 4, 16, 16
    Cout, k, stride, padding, groups = 8, 3, 1, 1, 2

    key = jax.random.PRNGKey(0)
    kx, kw = jax.random.split(key)

    x = jax.random.normal(kx, (N, Cin, H, W), dtype=jnp.float32)

    # kaiming_normal_(mode='fan_out', nonlinearity='relu'):
    # std = sqrt(2 / fan_out), fan_out = Cout * k * k.
    fan_out = Cout * k * k
    std = (2.0 / fan_out) ** 0.5
    weight = std * jax.random.normal(kw, (Cout, Cin // groups, k, k),
                                     dtype=jnp.float32)

    # The kernel feeds the MXU in bf16; quantize the test operands so the f32
    # reference sees identical input values.
    x = x.astype(jnp.bfloat16).astype(jnp.float32)
    weight = weight.astype(jnp.bfloat16).astype(jnp.float32)

    # _init_batch_norm: gamma=1, beta=0; include_batchnorm=True -> no conv bias.
    gamma = jnp.ones((Cout,), dtype=jnp.float32)
    beta = jnp.zeros((Cout,), dtype=jnp.float32)

    args = dict(k=k, stride=stride, padding=padding, groups=groups)
    ref = jax.block_until_ready(_reference(x, weight, gamma, beta, **args))

    # Default (perf) path: bf16 conv intermediate -> ~2^-8 relative storage
    # error on the pre-BN activations, hence the looser tolerance here.
    out = jax.block_until_ready(conv_bn_relu(x, weight, gamma, beta, **args))
    assert out.shape == (N, Cout, H, W), out.shape
    assert jnp.allclose(out, ref, rtol=1e-2, atol=1e-2), \
        float(jnp.max(jnp.abs(out - ref)))

    # f32 conv intermediate: tight numerical check of the full pipeline.
    out32 = jax.block_until_ready(
        conv_bn_relu(x, weight, gamma, beta, conv_dtype=jnp.float32, **args))
    assert jnp.allclose(out32, ref, rtol=1e-3, atol=1e-3), \
        float(jnp.max(jnp.abs(out32 - ref)))

    # Forced 128-wide M tiles: exercises cross-tile BN-stat accumulation.
    out_t = jax.block_until_ready(
        conv_bn_relu(x, weight, gamma, beta, conv_dtype=jnp.float32,
                     max_m_tile=128, **args))
    assert jnp.allclose(out_t, ref, rtol=1e-3, atol=1e-3), \
        float(jnp.max(jnp.abs(out_t - ref)))

    # Batch of 1: exercises the M-outer "parallel" split (v7x megacore path)
    # and the per-(n, m_outer) partial-statistics merge in the epilogue.
    x1 = x[:1]
    ref1 = jax.block_until_ready(_reference(x1, weight, gamma, beta, **args))
    out1 = jax.block_until_ready(
        conv_bn_relu(x1, weight, gamma, beta, conv_dtype=jnp.float32,
                     max_m_tile=128, **args))
    assert jnp.allclose(out1, ref1, rtol=1e-3, atol=1e-3), \
        float(jnp.max(jnp.abs(out1 - ref1)))

    print("KERNEL_OK")
</pallas_src>

<mosaic_0001>
module attributes {stable_mosaic.version = 11 : i64} {
  func.func @_conv_stats_kernel(%arg0: i32, %arg1: i32, %arg2: i32, %arg3: memref<1x36x256xbf16, #tpu.memory_space<vmem>>, %arg4: memref<8x36xbf16, #tpu.memory_space<vmem>>, %arg5: memref<1x8x256xbf16, #tpu.memory_space<vmem>>, %arg6: memref<1x1x8x1xf32, #tpu.memory_space<vmem>>, %arg7: memref<1x1x8x1xf32, #tpu.memory_space<vmem>>) attributes {dimension_semantics = [#tpu.dimension_semantics<parallel>, #tpu.dimension_semantics<parallel>, #tpu.dimension_semantics<arbitrary>], iteration_bounds = array<i64: 2, 1, 1>, scalar_prefetch = 0 : i64, scratch_operands = 0 : i64, tpu.core_type = #tpu.core_type<tc>, window_params = [{transform_indices = @transform_0, window_bounds = array<i64: 1, 36, 256>}, {pipeline_mode = #tpu.pipeline_mode<synchronous>, transform_indices = @transform_1, window_bounds = array<i64: 8, 36>}, {transform_indices = @transform_2, window_bounds = array<i64: 1, 8, 256>}, {transform_indices = @transform_3, window_bounds = array<i64: 1, 1, 8, 1>}, {transform_indices = @transform_4, window_bounds = array<i64: 1, 1, 8, 1>}]} {
    %c0 = arith.constant 0 : index
    %c0_0 = arith.constant 0 : index
    %0 = vector.load %arg4[%c0, %c0_0] : memref<8x36xbf16, #tpu.memory_space<vmem>>, vector<8x36xbf16>
    %c0_1 = arith.constant 0 : index
    %c0_2 = arith.constant 0 : index
    %c0_3 = arith.constant 0 : index
    %1 = vector.load %arg3[%c0_1, %c0_2, %c0_3] : memref<1x36x256xbf16, #tpu.memory_space<vmem>>, vector<1x36x256xbf16>
    %2 = vector.shape_cast %1 : vector<1x36x256xbf16> to vector<36x256xbf16>
    %cst = arith.constant dense<0.000000e+00> : vector<8x256xf32>
    %3 = tpu.matmul %0, %2, %cst {dimension_numbers = #tpu.dot_dimension_numbers<[1], [0], [0], [1], [0, 0, 1, 1], [], []>} : vector<8x36xbf16>, vector<36x256xbf16>, vector<8x256xf32> -> vector<8x256xf32>
    %4 = arith.truncf %3 : vector<8x256xf32> to vector<8x256xbf16>
    %c0_4 = arith.constant 0 : index
    %c0_5 = arith.constant 0 : index
    %c0_6 = arith.constant 0 : index
    %5 = vector.load %arg5[%c0_4, %c0_5, %c0_6] : memref<1x8x256xbf16, #tpu.memory_space<vmem>>, vector<1x8x256xbf16>
    %6 = vector.shape_cast %5 : vector<1x8x256xbf16> to vector<8x256xbf16>
    %7 = vector.shape_cast %4 : vector<8x256xbf16> to vector<1x8x256xbf16>
    tpu.vector_store %arg5[%c0_4, %c0_5, %c0_6], %7 {strides = array<i32>} : memref<1x8x256xbf16, #tpu.memory_space<vmem>>, vector<1x8x256xbf16>,
    %cst_7 = arith.constant dense<0.000000e+00> : vector<8xf32>
    %8 = vector.multi_reduction <add>, %3, %cst_7 [1] : vector<8x256xf32> to vector<8xf32>
    %9 = vector.shape_cast %8 : vector<8xf32> to vector<8x1xf32>
    %10 = arith.mulf %3, %3 : vector<8x256xf32>
    %cst_8 = arith.constant dense<0.000000e+00> : vector<8xf32>
    %11 = vector.multi_reduction <add>, %10, %cst_8 [1] : vector<8x256xf32> to vector<8xf32>
    %12 = vector.shape_cast %11 : vector<8xf32> to vector<8x1xf32>
    %c0_i32 = arith.constant 0 : i32
    %13 = arith.cmpi eq, %arg2, %c0_i32 : i32
    %14 = arith.extui %13 : i1 to i32
    %c0_i32_9 = arith.constant 0 : i32
    %15 = arith.cmpi ne, %14, %c0_i32_9 : i32
    scf.if %15 {
      %c0_12 = arith.constant 0 : index
      %c0_13 = arith.constant 0 : index
      %c0_14 = arith.constant 0 : index
      %c0_15 = arith.constant 0 : index
      %19 = vector.load %arg6[%c0_12, %c0_13, %c0_14, %c0_15] : memref<1x1x8x1xf32, #tpu.memory_space<vmem>>, vector<1x1x8x1xf32>
      %20 = vector.shape_cast %19 : vector<1x1x8x1xf32> to vector<8x1xf32>
      %21 = vector.shape_cast %9 : vector<8x1xf32> to vector<1x1x8x1xf32>
      tpu.vector_store %arg6[%c0_12, %c0_13, %c0_14, %c0_15], %21 {strides = array<i32>} : memref<1x1x8x1xf32, #tpu.memory_space<vmem>>, vector<1x1x8x1xf32>,
      %c0_16 = arith.constant 0 : index
      %c0_17 = arith.constant 0 : index
      %c0_18 = arith.constant 0 : index
      %c0_19 = arith.constant 0 : index
      %22 = vector.load %arg7[%c0_16, %c0_17, %c0_18, %c0_19] : memref<1x1x8x1xf32, #tpu.memory_space<vmem>>, vector<1x1x8x1xf32>
      %23 = vector.shape_cast %22 : vector<1x1x8x1xf32> to vector<8x1xf32>
      %24 = vector.shape_cast %12 : vector<8x1xf32> to vector<1x1x8x1xf32>
      tpu.vector_store %arg7[%c0_16, %c0_17, %c0_18, %c0_19], %24 {strides = array<i32>} : memref<1x1x8x1xf32, #tpu.memory_space<vmem>>, vector<1x1x8x1xf32>,
    } else {
    }
    %c0_i32_10 = arith.constant 0 : i32
    %16 = arith.cmpi sgt, %arg2, %c0_i32_10 : i32
    %17 = arith.extui %16 : i1 to i32
    %c0_i32_11 = arith.constant 0 : i32
    %18 = arith.cmpi ne, %17, %c0_i32_11 : i32
    scf.if %18 {
      %c0_12 = arith.constant 0 : index
      %c0_13 = arith.constant 0 : index
      %c0_14 = arith.constant 0 : index
      %c0_15 = arith.constant 0 : index
      %19 = vector.load %arg6[%c0_12, %c0_13, %c0_14, %c0_15] : memref<1x1x8x1xf32, #tpu.memory_space<vmem>>, vector<1x1x8x1xf32>
      %20 = vector.shape_cast %19 : vector<1x1x8x1xf32> to vector<8x1xf32>
      %21 = arith.addf %20, %9 : vector<8x1xf32>
      %c0_16 = arith.constant 0 : index
      %c0_17 = arith.constant 0 : index
      %c0_18 = arith.constant 0 : index
      %c0_19 = arith.constant 0 : index
      %22 = vector.load %arg6[%c0_16, %c0_17, %c0_18, %c0_19] : memref<1x1x8x1xf32, #tpu.memory_space<vmem>>, vector<1x1x8x1xf32>
      %23 = vector.shape_cast %22 : vector<1x1x8x1xf32> to vector<8x1xf32>
      %24 = vector.shape_cast %21 : vector<8x1xf32> to vector<1x1x8x1xf32>
      tpu.vector_store %arg6[%c0_16, %c0_17, %c0_18, %c0_19], %24 {strides = array<i32>} : memref<1x1x8x1xf32, #tpu.memory_space<vmem>>, vector<1x1x8x1xf32>,
      %c0_20 = arith.constant 0 : index
      %c0_21 = arith.constant 0 : index
      %c0_22 = arith.constant 0 : index
      %c0_23 = arith.constant 0 : index
      %25 = vector.load %arg7[%c0_20, %c0_21, %c0_22, %c0_23] : memref<1x1x8x1xf32, #tpu.memory_space<vmem>>, vector<1x1x8x1xf32>
      %26 = vector.shape_cast %25 : vector<1x1x8x1xf32> to vector<8x1xf32>
      %27 = arith.addf %26, %12 : vector<8x1xf32>
      %c0_24 = arith.constant 0 : index
      %c0_25 = arith.constant 0 : index
      %c0_26 = arith.constant 0 : index
      %c0_27 = arith.constant 0 : index
      %28 = vector.load %arg7[%c0_24, %c0_25, %c0_26, %c0_27] : memref<1x1x8x1xf32, #tpu.memory_space<vmem>>, vector<1x1x8x1xf32>
      %29 = vector.shape_cast %28 : vector<1x1x8x1xf32> to vector<8x1xf32>
      %30 = vector.shape_cast %27 : vector<8x1xf32> to vector<1x1x8x1xf32>
      tpu.vector_store %arg7[%c0_24, %c0_25, %c0_26, %c0_27], %30 {strides = array<i32>} : memref<1x1x8x1xf32, #tpu.memory_space<vmem>>, vector<1x1x8x1xf32>,
    } else {
    }
    return
  }
  func.func @transform_0(%arg0: i32, %arg1: i32, %arg2: i32) -> (i32, i32, i32) {
    %c1_i32 = arith.constant 1 : i32
    %0 = arith.muli %arg1, %c1_i32 : i32
    %1 = arith.addi %0, %arg2 : i32
    %c0_i32 = arith.constant 0 : i32
    %c0_i32_0 = arith.constant 0 : i32
    return %arg0, %c0_i32, %1 : i32, i32, i32
  }
  func.func @transform_1(%arg0: i32, %arg1: i32, %arg2: i32) -> (i32, i32) {
    %c0_i32 = arith.constant 0 : i32
    %c0_i32_0 = arith.constant 0 : i32
    %c0_i32_1 = arith.constant 0 : i32
    return %c0_i32, %c0_i32_0 : i32, i32
  }
  func.func @transform_2(%arg0: i32, %arg1: i32, %arg2: i32) -> (i32, i32, i32) {
    %c1_i32 = arith.constant 1 : i32
    %0 = arith.muli %arg1, %c1_i32 : i32
    %1 = arith.addi %0, %arg2 : i32
    %c0_i32 = arith.constant 0 : i32
    %c0_i32_0 = arith.constant 0 : i32
    return %arg0, %c0_i32, %1 : i32, i32, i32
  }
  func.func @transform_3(%arg0: i32, %arg1: i32, %arg2: i32) -> (i32, i32, i32, i32) {
    %c0_i32 = arith.constant 0 : i32
    %c0_i32_0 = arith.constant 0 : i32
    %c0_i32_1 = arith.constant 0 : i32
    return %arg0, %arg1, %c0_i32, %c0_i32_0 : i32, i32, i32, i32
  }
  func.func @transform_4(%arg0: i32, %arg1: i32, %arg2: i32) -> (i32, i32, i32, i32) {
    %c0_i32 = arith.constant 0 : i32
    %c0_i32_0 = arith.constant 0 : i32
    %c0_i32_1 = arith.constant 0 : i32
    return %arg0, %arg1, %c0_i32, %c0_i32_0 : i32, i32, i32, i32
  }
}

module attributes {stable_mosaic.version = 11 : i64} {
  func.func @_bn_relu_kernel(%arg0: i32, %arg1: i32, %arg2: memref<1x8x256xbf16, #tpu.memory_space<vmem>>, %arg3: memref<1x8x1xf32, #tpu.memory_space<vmem>>, %arg4: memref<1x8x1xf32, #tpu.memory_space<vmem>>, %arg5: memref<1x8x256xf32, #tpu.memory_space<vmem>>) attributes {dimension_semantics = [#tpu.dimension_semantics<parallel>, #tpu.dimension_semantics<parallel>], iteration_bounds = array<i64: 2, 1>, scalar_prefetch = 0 : i64, scratch_operands = 0 : i64, tpu.core_type = #tpu.core_type<tc>, window_params = [{transform_indices = @transform_0, window_bounds = array<i64: 1, 8, 256>}, {pipeline_mode = #tpu.pipeline_mode<synchronous>, transform_indices = @transform_1, window_bounds = array<i64: 1, 8, 1>}, {pipeline_mode = #tpu.pipeline_mode<synchronous>, transform_indices = @transform_2, window_bounds = array<i64: 1, 8, 1>}, {transform_indices = @transform_3, window_bounds = array<i64: 1, 8, 256>}]} {
    %c0 = arith.constant 0 : index
    %c0_0 = arith.constant 0 : index
    %c0_1 = arith.constant 0 : index
    %0 = vector.load %arg2[%c0, %c0_0, %c0_1] : memref<1x8x256xbf16, #tpu.memory_space<vmem>>, vector<1x8x256xbf16>
    %1 = vector.shape_cast %0 : vector<1x8x256xbf16> to vector<8x256xbf16>
    %2 = arith.extf %1 : vector<8x256xbf16> to vector<8x256xf32>
    %c0_2 = arith.constant 0 : index
    %c0_3 = arith.constant 0 : index
    %c0_4 = arith.constant 0 : index
    %3 = vector.load %arg3[%c0_2, %c0_3, %c0_4] : memref<1x8x1xf32, #tpu.memory_space<vmem>>, vector<1x8x1xf32>
    %4 = vector.shape_cast %3 : vector<1x8x1xf32> to vector<8x1xf32>
    %5 = vector.broadcast %4 : vector<8x1xf32> to vector<8x256xf32>
    %6 = arith.mulf %2, %5 : vector<8x256xf32>
    %c0_5 = arith.constant 0 : index
    %c0_6 = arith.constant 0 : index
    %c0_7 = arith.constant 0 : index
    %7 = vector.load %arg4[%c0_5, %c0_6, %c0_7] : memref<1x8x1xf32, #tpu.memory_space<vmem>>, vector<1x8x1xf32>
    %8 = vector.shape_cast %7 : vector<1x8x1xf32> to vector<8x1xf32>
    %9 = vector.broadcast %8 : vector<8x1xf32> to vector<8x256xf32>
    %10 = arith.addf %6, %9 : vector<8x256xf32>
    %cst = arith.constant 0.000000e+00 : f32
    %11 = vector.broadcast %cst : f32 to vector<8x256xf32>
    %12 = arith.maximumf %10, %11 : vector<8x256xf32>
    %c0_8 = arith.constant 0 : index
    %c0_9 = arith.constant 0 : index
    %c0_10 = arith.constant 0 : index
    %13 = vector.load %arg5[%c0_8, %c0_9, %c0_10] : memref<1x8x256xf32, #tpu.memory_space<vmem>>, vector<1x8x256xf32>
    %14 = vector.shape_cast %13 : vector<1x8x256xf32> to vector<8x256xf32>
    %15 = vector.shape_cast %12 : vector<8x256xf32> to vector<1x8x256xf32>
    tpu.vector_store %arg5[%c0_8, %c0_9, %c0_10], %15 {strides = array<i32>} : memref<1x8x256xf32, #tpu.memory_space<vmem>>, vector<1x8x256xf32>,
    return
  }
  func.func @transform_0(%arg0: i32, %arg1: i32) -> (i32, i32, i32) {
    %c0_i32 = arith.constant 0 : i32
    %c0_i32_0 = arith.constant 0 : i32
    return %arg0, %c0_i32, %arg1 : i32, i32, i32
  }
  func.func @transform_1(%arg0: i32, %arg1: i32) -> (i32, i32, i32) {
    %c0_i32 = arith.constant 0 : i32
    %c0_i32_0 = arith.constant 0 : i32
    %c0_i32_1 = arith.constant 0 : i32
    %c0_i32_2 = arith.constant 0 : i32
    return %c0_i32, %c0_i32_0, %c0_i32_1 : i32, i32, i32
  }
  func.func @transform_2(%arg0: i32, %arg1: i32) -> (i32, i32, i32) {
    %c0_i32 = arith.constant 0 : i32
    %c0_i32_0 = arith.constant 0 : i32
    %c0_i32_1 = arith.constant 0 : i32
    %c0_i32_2 = arith.constant 0 : i32
    return %c0_i32, %c0_i32_0, %c0_i32_1 : i32, i32, i32
  }
  func.func @transform_3(%arg0: i32, %arg1: i32) -> (i32, i32, i32) {
    %c0_i32 = arith.constant 0 : i32
    %c0_i32_0 = arith.constant 0 : i32
    return %arg0, %c0_i32, %arg1 : i32, i32, i32
  }
}

</mosaic_0001>

<bundles_post_ra>
// kernel: conv_bn_relu.3
= control target key start
LH: loop header
LB: loop body
LE: loop exit
PB: predicated region body
PF: predicated region fallthrough
CT: control target
= control target key end

     0   :  { %s404_s12 = smov 0   ;;  %s406_s13 = smov 0   ;;  %s443_s0 = inlined_call_operand.vmem [shape: bf16[2,8,256], index: 0, kind: input, shape index: {}]   ;;  %s444_s1 = inlined_call_operand.vmem [shape: f32[1,8,1], index: 1, kind: input, shape index: {}]   ;;  %s445_s2 = inlined_call_operand.vmem [shape: f32[1,8,1], index: 2, kind: input, shape index: {}]   ;;  %s446_s3 = inlined_call_operand.vmem [shape: f32[2,8,256], index: 3, kind: output, shape index: {}]  }
   0x1   :  { %s408_s14 = smov 0  }
   0x2 LB: > { %s25_s15 = sadd.s32 1, %s377_s13  ;;  %p324_p0 = scmp.ge.s32.totalorder %s381_s14, 1  ;;  %s381_s14 = sphi %s408_s14, %s13_s14   ;;  %s377_s13 = sphi %s406_s13, %s448_s13   ;;  %s373_s12 = sphi %s404_s12, %s447_s12  }
   0x3   : > { %p27_p1 = scmp.ge.s32.totalorder %s25_s15, 2  ;;  %p158_p2 = scmp.lt.s32.totalorder %s381_s14, 3 }
   0x5   : > { %s450_s15 = smov (%p27_p1, %s25_s15), 0  ;;  %p159_p3 = pnand %p324_p0, %p158_p2 }
   0x6   : > { %v213_v0 = vld [vmem:[%s444_s1] sm:$0xff] (!%p159_p3)  ;;  %v383_v1 = vmov (!%p159_p3), 0   ;;  %p191_p4 = scmp.lt.s32.totalorder (!%p159_p3), %s373_s12, 1 }
   0x7   : > { %162 = sbr.rel (%p159_p3) target bundleno = 145 (0x91), region = 32  ;;  %358 = vset.pattern.permute.xlu0 (!%p159_p3), %v383_v1  ;;  %v221_v2 = vld [vmem:[%s445_s2] sm:$0xff] (!%p159_p3) }
   0x8   : > { %216 = vperm.xlu0 (!%p159_p3), %358, %v213_v0  }
   0xc   : > { %224 = vperm.xlu0 (!%p159_p3), %358, %v221_v2  }
   0xe   : > { %s452_s12 = smov (!%p191_p4, %s373_s12), 1 }
   0xf   : > { %s331_s20 = sshll.u32 %s452_s12, 3  ;;  %s332_s24 = sshll.u32 %s452_s12, 4 }
  0x10   : > { %s198_s23 = scalar_lea.vmem %s443_s0, %s331_s20  ;;  %s208_s27 = scalar_lea.vmem %s446_s3, %s332_s24 }
  0x11   : > { %v210_v3 = vld [vmem:[%s198_s23] sm:$0xff] }
  0x12   : > { %v211_v4 = vunpack.c.l.bf16 %v210_v3  ;;  %v212_v5 = vunpack.c.h.bf16 %v210_v3 }
  0x87   : > { %v217_v6 = vpop.permute.xlu0 %216 }
  0x88   : > { %v219_v7 = vmul.f32 %v217_v6, %v211_v4  ;;  %v220_v8 = vmul.f32 %v217_v6, %v212_v5 }
  0x8b   : > { %v225_v9 = vpop.permute.xlu0 %224 }
  0x8c   : > { %v227_v10 = vadd.f32 %v225_v9, %v219_v7  ;;  %v228_v11 = vadd.f32 %v225_v9, %v220_v8 }
  0x8e   : > { %v229_v12 = vmax.f32 %v227_v10, 0.0  ;;  %v230_v13 = vmax.f32 %v228_v11, 0.0 }
  0x90   : > { %231 = vst [vmem:[%s208_s27] sm:$0xff] %v229_v12  ;;  %232 = vst [vmem:[%s208_s27 + $0x8] sm:$0xff] %v230_v13 }
  0x91 PF: > { %s13_s14 = sadd.s32 1, %s381_s14   ;;  %s447_s12 = smov %s377_s13 }
  0x92   : > { %p10_p5 = scmp.ge.s32.totalorder %s13_s14, 4   ;;  %s448_s13 = smov %s450_s15 }
  0x94   :  { %12 = sbr.rel (!%p10_p5) target bundleno = 2 (0x2), region = 62 }

// kernel: conv_bn_relu.2
= control target key start
LH: loop header
LB: loop body
LE: loop exit
PB: predicated region body
PF: predicated region fallthrough
CT: control target
= control target key end

     0   :  { %s694_s15 = smov 0   ;;  %s696_s16 = smov 0   ;;  %s736_s0 = inlined_call_operand.vmem [shape: bf16[2,36,256], index: 0, kind: input, shape index: {}]   ;;  %s737_s1 = inlined_call_operand.vmem [shape: bf16[8,36], index: 1, kind: input, shape index: {}]   ;;  %s738_s2 = inlined_call_operand.vmem [shape: bf16[2,8,256], index: 2, kind: output, shape index: {0}]   ;;  %s739_s3 = inlined_call_operand.vmem [shape: f32[2,1,8,1], index: 3, kind: output, shape index: {1}]   ;;  %s740_s4 = inlined_call_operand.vmem [shape: f32[2,1,8,1], index: 4, kind: output, shape index: {2}]  }
   0x1   :  { %s698_s17 = smov 0  }
   0x2 LB: > { %s34_s18 = sadd.s32 1, %s662_s16  ;;  %p591_p0 = scmp.ge.s32.totalorder %s666_s17, 1  ;;  %s666_s17 = sphi %s698_s17, %s15_s17   ;;  %s662_s16 = sphi %s696_s16, %s742_s16   ;;  %s658_s15 = sphi %s694_s15, %s741_s15  }
   0x3   : > { %p36_p1 = scmp.ge.s32.totalorder %s34_s18, 2  ;;  %p205_p2 = scmp.lt.s32.totalorder %s666_s17, 3 }
   0x5   : > { %s744_s18 = smov (%p36_p1, %s34_s18), 0  ;;  %p206_p3 = pnand %p591_p0, %p205_p2 }
   0x6   : > { %p257_p4 = scmp.lt.s32.totalorder (!%p206_p3), %s658_s15, 1  ;;  %v668_v0 = vmov (!%p206_p3), 0   ;;  %vm329_vm0 = vcmask (!%p206_p3), 1041408   ;;  %v294_v9 = vld [vmem:[%s737_s1] sm:$0xf] (!%p206_p3)  ;;  %vm325_vm1 = vcmask (!%p206_p3), 293888  }
   0x7   : > { %209 = sbr.rel (%p206_p3) target bundleno = 393 (0x189), region = 28  ;;  %368 = vmatprep.mubr.bf16.mxu0 (!%p206_p3), %v668_v0  ;;  %vm398_vm2 = vcmask (!%p206_p3), 7168  }
   0xe   : > { %s746_s15 = smov (!%p257_p4, %s658_s15), 1 }
   0xf   : > { %s610_s19 = smul.u32 40, %s746_s15  ;;  %s608_s25 = sshll.u32 %s746_s15, 3 }
  0x10   : > { %s276_s28 = scalar_lea.vmem %s738_s2, %s608_s25  ;;  %s285_s5 = scalar_lea.vmem %s739_s3, %s608_s25 }
  0x11   : > { %s264_s22 = scalar_lea.vmem %s736_s0, %s610_s19  ;;  %s292_s8 = scalar_lea.vmem %s740_s4, %s608_s25 }
  0x12   : > { %v636_v1 = vld [vmem:[%s264_s22 + $0x4] ss:$8 sps:$4 sm:$0xff]   ;;  %v638_v2 = vld [vmem:[%s264_s22] ss:$8 sps:$4 sm:$0xff]   ;;  %v639_v3 = vld [vmem:[%s264_s22 + $0x14] ss:$8 sps:$4 sm:$0xff]  }
  0x13   : > { %336 = vmatprep.subr.bf16.mxu0 %v636_v1  ;;  %v299_v4 = vld [vmem:[%s264_s22 + $0x20] sm:$0x33]  ;;  %v641_v5 = vld [vmem:[%s264_s22 + $0x10] ss:$8 sps:$4 sm:$0xff]  }
  0x14   : > { %337 = vmatpush1.bf16.msra.mxu0 %v638_v2  ;;  %v602_v6 = vcombine.high %v299_v4, %v299_v4  ;;  %v601_v7 = vcombine.low %v299_v4, %v299_v4 }
  0x15   : > { %338 = vmatprep.subr.bf16.mxu0 %v639_v3 }
  0x16   : > { %v331_v8 = vsel %vm329_vm0, %v601_v7, 0 }
  0x18   : > { %339 = vmatpush1.bf16.msra.mxu0 %v641_v5 }
  0x19   : > { %603 = vmatprep.subr.msk.bf16.mxu0 %vm329_vm0, %v602_v6 }
  0x1c   : > { %341 = vmatpush1.bf16.msra.mxu0 %v331_v8 }
  0x1f   : > { %604 = vmatmul.mubr.msk.bf16.vlgmr.msra.gmra.mrb[0].mxu0 %vm325_vm1, %v294_v9 }
  0xf2   : > { %v370_v10 = vpop.f32.mrb[0].mxu0 }
  0xf3   : > { %v372_v11 = vpop.f32.mrb[1].mxu0  ;;  %v389_v12 = vmul.f32 %v370_v10, %v370_v10 }
  0xf4   : > { %v609_v13 = vpack.c.bf16 %v372_v11, %v370_v10  ;;  %v374_v14 = vpop.f32.mrb[2].mxu0  ;;  %v386_v15 = vadd.f32 %v372_v11, %v370_v10  ;;  %v390_v16 = vmul.f32 %v372_v11, %v372_v11 }
  0xf5   : > { %v375_v17 = vpop.f32.mrb[3].mxu0 }
  0xf6   : > { %385 = vst [vmem:[%s276_s28] sm:$0xff] %v609_v13  ;;  %387 = vadd.xlane.f32.xlu0 %v386_v15  ;;  %v391_v18 = vadd.f32 %v390_v16, %v389_v12 }
  0xfa   : > { %392 = vadd.xlane.f32.xlu0 %v391_v18 }
 0x183   : > { %v388_v19 = vpop.xlane.xlu0 %387 }
 0x184   : > { %399 = vst.msk [vmem:[%s285_s5] sm:$0xff] %vm398_vm2, %v388_v19 }
 0x187   : > { %v393_v20 = vpop.xlane.xlu0 %392 }
 0x188   : > { %400 = vst.msk [vmem:[%s292_s8] sm:$0xff] %vm398_vm2, %v393_v20 }
 0x189 PF: > { %s15_s17 = sadd.s32 1, %s666_s17   ;;  %s741_s15 = smov %s662_s16 }
 0x18a   : > { %p12_p5 = scmp.ge.s32.totalorder %s15_s17, 4   ;;  %s742_s16 = smov %s744_s18 }
 0x18c   :  { %14 = sbr.rel (!%p12_p5) target bundleno = 2 (0x2), region = 90 }

</bundles_post_ra>
